<compile_context>
chip_gen: v7x
topology: tpu7x:2x2x1
jax: 0.10.0
libtpu: 0.0.40
codegen_flags: <defaults>
</compile_context>

<pallas_src>
import jax
import jax.numpy as jnp
from jax.experimental import pallas as pl
from jax.experimental.pallas import tpu as pltpu


LANES = 128


def _tpu_plan():
    """Return (per-input tile byte budget, max TensorCores to shard over)."""
    kind = ""
    try:
        kind = jax.devices()[0].device_kind.lower()
    except Exception:
        pass
    if "v7" in kind:
        # 64 MiB VMEM per TC: 2 inputs x 2 buffers x 4 MiB = 16 MiB pipeline.
        return 4 << 20, 2
    if "v5" in kind or "v6" in kind:
        # 128 MiB VMEM, single TensorCore per chip: 8 MiB/input tile -> 32 MiB.
        return 8 << 20, 1
    # Unknown generation (v4, interpret, ...): conservative single-core plan.
    return 4 << 20, 1


def _dice_partial_kernel(threshold, rows_total, block_rows, blocks_per_core):
    """Accumulate per-lane partials: tp = sum(gt*pr), s = sum(gt+pr)."""
    eight_wide = (block_rows % 8 == 0) and block_rows >= 8

    def _reduce(x):
        # (block_rows, 128) f32 -> (8, 128) via cheap VALU adds over vreg rows
        # (avoids a cross-sublane XLU collapse on every step); tiny non-multiple
        # tiles fall back to a (1, 128) keepdims reduction.
        if eight_wide:
            return jnp.sum(x.reshape(block_rows // 8, 8, LANES), axis=0)
        return jnp.sum(x, axis=0, keepdims=True)

    def kernel(p_ref, g_ref, tp_ref, s_ref):
        i = pl.program_id(1)

        @pl.when(i == 0)
        def _init():
            tp_ref[...] = jnp.zeros_like(tp_ref)
            s_ref[...] = jnp.zeros_like(s_ref)

        # Unclamped absolute block id.  Blocks whose window extends past the
        # end of the array (partial edge block, or a block whose index_map was
        # clamped to stay in-bounds) take the masked path.
        blk = pl.program_id(0) * blocks_per_core + i
        row0 = blk * block_rows
        needs_mask = row0 + block_rows > rows_total

        def _accumulate(pr, g):
            tp_part = _reduce(g * pr)
            s_part = _reduce(g + pr)
            if eight_wide:
                tp_ref[0, :, :] += tp_part
                s_ref[0, :, :] += s_part
            else:
                tp_ref[0, 0:1, :] += tp_part
                s_ref[0, 0:1, :] += s_part

        @pl.when(jnp.logical_not(needs_mask))
        def _fast():
            # Interior block: no row mask; compare in the native streamed dtype.
            g = g_ref[...].astype(jnp.float32)
            if threshold is None:
                pr = p_ref[...].astype(jnp.float32)
            else:
                pr = (p_ref[...] > threshold).astype(jnp.float32)
            _accumulate(pr, g)

        @pl.when(needs_mask)
        def _masked():
            # Last (partial) block or clamped duplicate block.  Mask pr AFTER
            # the compare (correct for any threshold sign) and mask g, so the
            # unspecified out-of-range tile contents never reach the sums.
            rid = jax.lax.broadcasted_iota(jnp.int32, (block_rows, 1), 0) + row0
            valid = rid < rows_total
            g = jnp.where(valid, g_ref[...].astype(jnp.float32), 0.0)
            if threshold is None:
                pr = jnp.where(valid, p_ref[...].astype(jnp.float32), 0.0)
            else:
                pr = jnp.where(valid & (p_ref[...] > threshold), 1.0, 0.0)
            _accumulate(pr, g)

    return kernel


def dice_loss(probs, targets, *, eps=1.0, threshold=0.5, ignore_channels=None):
    """Pallas implementation of DiceLoss.forward (returns the dice score scalar)."""
    assert probs.shape[0] == targets.shape[0]
    if ignore_channels is not None:
        # _take_channels: drop ignored channels along dim=1 (plain-JAX glue).
        keep = [c for c in range(probs.shape[1]) if c not in ignore_channels]
        idx = jnp.asarray(keep, dtype=jnp.int32)
        probs = jnp.take(probs, idx, axis=1)
        targets = jnp.take(targets, idx, axis=1)

    thr = None if threshold is None else float(threshold)

    # Flatten in native dtype (free reshape of contiguous data; no pad, no cast).
    p_flat = probs.reshape(-1)
    g_flat = targets.reshape(-1)
    n = p_flat.shape[0]

    rows = n // LANES
    n_aligned = rows * LANES

    tp = jnp.float32(0.0)
    s = jnp.float32(0.0)

    if rows > 0:
        if n_aligned == n:
            p2 = p_flat.reshape(rows, LANES)
            g2 = g_flat.reshape(rows, LANES)
        else:
            # TODO(synk): rare unaligned-n path.  The prefix slice below makes
            # XLA materialize a near-full copy of both tensors before the
            # kernel (~2x extra HBM traffic); keep total element count a
            # multiple of 128 to stay single-pass.
            p2 = p_flat[:n_aligned].reshape(rows, LANES)
            g2 = g_flat[:n_aligned].reshape(rows, LANES)

        tile_budget_bytes, max_cores = _tpu_plan()
        itemsize = max(p2.dtype.itemsize, g2.dtype.itemsize)
        # Rows per tile from the byte budget; multiple of 32 keeps packed
        # sublanes happy for 16-bit / 8-bit streamed dtypes.
        budget_rows = max(32, (tile_budget_bytes // (LANES * itemsize)) // 32 * 32)
        block_rows = rows if rows <= budget_rows else budget_rows

        num_blocks = pl.cdiv(rows, block_rows)
        n_cores = max_cores if num_blocks >= max_cores else 1
        bpc = pl.cdiv(num_blocks, n_cores)
        last_blk = num_blocks - 1

        def in_map(c, i):
            # Clamp so the DMA window is always in-bounds; clamped (duplicate)
            # blocks are fully masked out inside the kernel.
            return (jnp.minimum(c * bpc + i, last_blk), 0)

        def out_map(c, i):
            return (c, 0, 0)

        # 2 pipeline buffers per input, plus slack for accumulators/scratch.
        tile_bytes = block_rows * LANES * (p2.dtype.itemsize + g2.dtype.itemsize)
        vmem_limit = min(2 * tile_bytes + (16 << 20), 100 << 20)

        tp_out, s_out = pl.pallas_call(
            _dice_partial_kernel(thr, rows, block_rows, bpc),
            out_shape=(
                jax.ShapeDtypeStruct((n_cores, 8, LANES), jnp.float32),
                jax.ShapeDtypeStruct((n_cores, 8, LANES), jnp.float32),
            ),
            grid_spec=pltpu.PrefetchScalarGridSpec(
                num_scalar_prefetch=0,
                grid=(n_cores, bpc),
                in_specs=[
                    pl.BlockSpec((block_rows, LANES), in_map),
                    pl.BlockSpec((block_rows, LANES), in_map),
                ],
                out_specs=[
                    pl.BlockSpec((1, 8, LANES), out_map),
                    pl.BlockSpec((1, 8, LANES), out_map),
                ],
            ),
            compiler_params=pltpu.CompilerParams(
                dimension_semantics=("parallel", "arbitrary"),
                vmem_limit_bytes=vmem_limit,
            ),
        )(p2, g2)

        tp = tp + jnp.sum(tp_out)
        s = s + jnp.sum(s_out)

    if n_aligned != n:
        # Sub-128-element ragged tail: trivial jnp reduction on the tail only.
        tail_p = p_flat[n_aligned:].astype(jnp.float32)
        tail_g = g_flat[n_aligned:].astype(jnp.float32)
        if thr is None:
            tail_pr = tail_p
        else:
            tail_pr = (tail_p > thr).astype(jnp.float32)
        tp = tp + jnp.sum(tail_g * tail_pr)
        s = s + jnp.sum(tail_g + tail_pr)

    eps = jnp.float32(eps)
    # (2*tp + eps) / (2*tp + fn + fp + eps) == (2*tp + eps) / (sum(pr) + sum(gt) + eps)
    return (2.0 * tp + eps) / (s + eps)


def dice_loss_ref(probs, targets, *, eps=1.0, threshold=0.5, ignore_channels=None):
    if ignore_channels is not None:
        keep = [c for c in range(probs.shape[1]) if c not in ignore_channels]
        idx = jnp.asarray(keep, dtype=jnp.int32)
        probs = jnp.take(probs, idx, axis=1)
        targets = jnp.take(targets, idx, axis=1)
    p = probs.astype(jnp.float32)
    pr = p if threshold is None else (p > threshold).astype(jnp.float32)
    gt = targets.astype(jnp.float32)
    tp = jnp.sum(gt * pr)
    fp = jnp.sum(pr) - tp
    fn = jnp.sum(gt) - tp
    return (2 * tp + eps) / (2 * tp + fn + fp + eps)


if __name__ == "__main__":
    key = jax.random.PRNGKey(0)
    k1, k2, k3, k4 = jax.random.split(key, 4)

    # NCHW, batch=2, channels=4, spatial=16 (lane-aligned case).
    probs = jax.random.uniform(k1, (2, 4, 16, 16), dtype=jnp.float32)
    targets = (jax.random.uniform(k2, (2, 4, 16, 16)) > 0.5).astype(jnp.float32)

    score = jax.block_until_ready(dice_loss(probs, targets, eps=1.0, threshold=0.5))
    ref = dice_loss_ref(probs, targets, eps=1.0, threshold=0.5)
    assert jnp.allclose(score, ref, rtol=1e-5, atol=1e-5), (score, ref)

    # Unaligned case: exercises masked-block path + jnp tail path.
    probs2 = jax.random.uniform(k3, (2, 3, 7, 13), dtype=jnp.float32)
    targets2 = (jax.random.uniform(k4, (2, 3, 7, 13)) > 0.5).astype(jnp.float32)
    score2 = jax.block_until_ready(dice_loss(probs2, targets2, eps=1.0, threshold=0.5))
    ref2 = dice_loss_ref(probs2, targets2, eps=1.0, threshold=0.5)
    assert jnp.allclose(score2, ref2, rtol=1e-5, atol=1e-5), (score2, ref2)

    # ignore_channels glue path.
    score3 = jax.block_until_ready(
        dice_loss(probs, targets, eps=1.0, threshold=0.5, ignore_channels=(0,)))
    ref3 = dice_loss_ref(probs, targets, eps=1.0, threshold=0.5, ignore_channels=(0,))
    assert jnp.allclose(score3, ref3, rtol=1e-5, atol=1e-5), (score3, ref3)

    print("KERNEL_OK")
</pallas_src>

<mosaic_0001>
module attributes {stable_mosaic.version = 11 : i64} {
  func.func @kernel(%arg0: i32, %arg1: i32, %arg2: memref<16x128xf32, #tpu.memory_space<vmem>>, %arg3: memref<16x128xf32, #tpu.memory_space<vmem>>, %arg4: memref<1x8x128xf32, #tpu.memory_space<vmem>>, %arg5: memref<1x8x128xf32, #tpu.memory_space<vmem>>) attributes {dimension_semantics = [#tpu.dimension_semantics<parallel>, #tpu.dimension_semantics<arbitrary>], iteration_bounds = array<i64: 1, 1>, scalar_prefetch = 0 : i64, scratch_operands = 0 : i64, tpu.core_type = #tpu.core_type<tc>, window_params = [{transform_indices = @transform_0, window_bounds = array<i64: 16, 128>}, {transform_indices = @transform_1, window_bounds = array<i64: 16, 128>}, {transform_indices = @transform_2, window_bounds = array<i64: 1, 8, 128>}, {transform_indices = @transform_3, window_bounds = array<i64: 1, 8, 128>}]} {
    %c0_i32 = arith.constant 0 : i32
    %0 = arith.cmpi eq, %arg1, %c0_i32 : i32
    %1 = arith.extui %0 : i1 to i32
    %c0_i32_0 = arith.constant 0 : i32
    %2 = arith.cmpi ne, %1, %c0_i32_0 : i32
    scf.if %2 {
      %cst = arith.constant 0.000000e+00 : f32
      %13 = vector.broadcast %cst : f32 to vector<1x8x128xf32>
      %c0 = arith.constant 0 : index
      %c0_5 = arith.constant 0 : index
      %c0_6 = arith.constant 0 : index
      %14 = vector.load %arg4[%c0, %c0_5, %c0_6] : memref<1x8x128xf32, #tpu.memory_space<vmem>>, vector<1x8x128xf32>
      tpu.vector_store %arg4[%c0, %c0_5, %c0_6], %13 {strides = array<i32>} : memref<1x8x128xf32, #tpu.memory_space<vmem>>, vector<1x8x128xf32>,
      %cst_7 = arith.constant 0.000000e+00 : f32
      %15 = vector.broadcast %cst_7 : f32 to vector<1x8x128xf32>
      %c0_8 = arith.constant 0 : index
      %c0_9 = arith.constant 0 : index
      %c0_10 = arith.constant 0 : index
      %16 = vector.load %arg5[%c0_8, %c0_9, %c0_10] : memref<1x8x128xf32, #tpu.memory_space<vmem>>, vector<1x8x128xf32>
      tpu.vector_store %arg5[%c0_8, %c0_9, %c0_10], %15 {strides = array<i32>} : memref<1x8x128xf32, #tpu.memory_space<vmem>>, vector<1x8x128xf32>,
    } else {
    }
    %c1_i32 = arith.constant 1 : i32
    %3 = arith.muli %arg0, %c1_i32 : i32
    %4 = arith.addi %3, %arg1 : i32
    %c16_i32 = arith.constant 16 : i32
    %5 = arith.muli %4, %c16_i32 : i32
    %c16_i32_1 = arith.constant 16 : i32
    %6 = arith.addi %5, %c16_i32_1 : i32
    %c16_i32_2 = arith.constant 16 : i32
    %7 = arith.cmpi sgt, %6, %c16_i32_2 : i32
    %true = arith.constant true
    %8 = arith.xori %7, %true : i1
    %9 = arith.extui %8 : i1 to i32
    %c0_i32_3 = arith.constant 0 : i32
    %10 = arith.cmpi ne, %9, %c0_i32_3 : i32
    scf.if %10 {
      %c0 = arith.constant 0 : index
      %c0_5 = arith.constant 0 : index
      %13 = vector.load %arg3[%c0, %c0_5] : memref<16x128xf32, #tpu.memory_space<vmem>>, vector<16x128xf32>
      %c0_6 = arith.constant 0 : index
      %c0_7 = arith.constant 0 : index
      %14 = vector.load %arg2[%c0_6, %c0_7] : memref<16x128xf32, #tpu.memory_space<vmem>>, vector<16x128xf32>
      %cst = arith.constant 5.000000e-01 : f32
      %15 = vector.broadcast %cst : f32 to vector<16x128xf32>
      %16 = arith.cmpf ogt, %14, %15 : vector<16x128xf32>
      %17 = arith.extui %16 : vector<16x128xi1> to vector<16x128xi32>
      %18 = arith.sitofp %17 : vector<16x128xi32> to vector<16x128xf32>
      %19 = arith.mulf %13, %18 : vector<16x128xf32>
      %20 = vector.shape_cast %19 : vector<16x128xf32> to vector<2x8x128xf32>
      %cst_8 = arith.constant dense<0.000000e+00> : vector<8x128xf32>
      %21 = vector.multi_reduction <add>, %20, %cst_8 [0] : vector<2x8x128xf32> to vector<8x128xf32>
      %22 = arith.addf %13, %18 : vector<16x128xf32>
      %23 = vector.shape_cast %22 : vector<16x128xf32> to vector<2x8x128xf32>
      %cst_9 = arith.constant dense<0.000000e+00> : vector<8x128xf32>
      %24 = vector.multi_reduction <add>, %23, %cst_9 [0] : vector<2x8x128xf32> to vector<8x128xf32>
      %c0_10 = arith.constant 0 : index
      %c0_11 = arith.constant 0 : index
      %c0_12 = arith.constant 0 : index
      %25 = vector.load %arg4[%c0_10, %c0_11, %c0_12] : memref<1x8x128xf32, #tpu.memory_space<vmem>>, vector<1x8x128xf32>
      %26 = vector.shape_cast %25 : vector<1x8x128xf32> to vector<8x128xf32>
      %27 = arith.addf %26, %21 : vector<8x128xf32>
      %c0_13 = arith.constant 0 : index
      %c0_14 = arith.constant 0 : index
      %c0_15 = arith.constant 0 : index
      %28 = vector.load %arg4[%c0_13, %c0_14, %c0_15] : memref<1x8x128xf32, #tpu.memory_space<vmem>>, vector<1x8x128xf32>
      %29 = vector.shape_cast %28 : vector<1x8x128xf32> to vector<8x128xf32>
      %30 = vector.shape_cast %27 : vector<8x128xf32> to vector<1x8x128xf32>
      tpu.vector_store %arg4[%c0_13, %c0_14, %c0_15], %30 {strides = array<i32>} : memref<1x8x128xf32, #tpu.memory_space<vmem>>, vector<1x8x128xf32>,
      %c0_16 = arith.constant 0 : index
      %c0_17 = arith.constant 0 : index
      %c0_18 = arith.constant 0 : index
      %31 = vector.load %arg5[%c0_16, %c0_17, %c0_18] : memref<1x8x128xf32, #tpu.memory_space<vmem>>, vector<1x8x128xf32>
      %32 = vector.shape_cast %31 : vector<1x8x128xf32> to vector<8x128xf32>
      %33 = arith.addf %32, %24 : vector<8x128xf32>
      %c0_19 = arith.constant 0 : index
      %c0_20 = arith.constant 0 : index
      %c0_21 = arith.constant 0 : index
      %34 = vector.load %arg5[%c0_19, %c0_20, %c0_21] : memref<1x8x128xf32, #tpu.memory_space<vmem>>, vector<1x8x128xf32>
      %35 = vector.shape_cast %34 : vector<1x8x128xf32> to vector<8x128xf32>
      %36 = vector.shape_cast %33 : vector<8x128xf32> to vector<1x8x128xf32>
      tpu.vector_store %arg5[%c0_19, %c0_20, %c0_21], %36 {strides = array<i32>} : memref<1x8x128xf32, #tpu.memory_space<vmem>>, vector<1x8x128xf32>,
    } else {
    }
    %11 = arith.extui %7 : i1 to i32
    %c0_i32_4 = arith.constant 0 : i32
    %12 = arith.cmpi ne, %11, %c0_i32_4 : i32
    scf.if %12 {
      %13 = tpu.iota {dimensions = array<i32: 0>} : vector<16x1xi32>
      %14 = vector.broadcast %5 : i32 to vector<16x1xi32>
      %15 = arith.addi %13, %14 : vector<16x1xi32>
      %c16_i32_5 = arith.constant 16 : i32
      %16 = vector.broadcast %c16_i32_5 : i32 to vector<16x1xi32>
      %17 = arith.cmpi slt, %15, %16 : vector<16x1xi32>
      %c0 = arith.constant 0 : index
      %c0_6 = arith.constant 0 : index
      %18 = vector.load %arg3[%c0, %c0_6] : memref<16x128xf32, #tpu.memory_space<vmem>>, vector<16x128xf32>
      %cst = arith.constant 0.000000e+00 : f32
      %19 = vector.shape_cast %17 : vector<16x1xi1> to vector<16x1xi1>
      %20 = vector.broadcast %19 : vector<16x1xi1> to vector<16x128xi1>
      %21 = vector.broadcast %cst : f32 to vector<16x128xf32>
      %22 = arith.select %20, %18, %21 : vector<16x128xi1>, vector<16x128xf32>
      %c0_7 = arith.constant 0 : index
      %c0_8 = arith.constant 0 : index
      %23 = vector.load %arg2[%c0_7, %c0_8] : memref<16x128xf32, #tpu.memory_space<vmem>>, vector<16x128xf32>
      %cst_9 = arith.constant 5.000000e-01 : f32
      %24 = vector.broadcast %cst_9 : f32 to vector<16x128xf32>
      %25 = arith.cmpf ogt, %23, %24 : vector<16x128xf32>
      %26 = vector.broadcast %17 : vector<16x1xi1> to vector<16x128xi1>
      %27 = arith.andi %26, %25 : vector<16x128xi1>
      %cst_10 = arith.constant 1.000000e+00 : f32
      %cst_11 = arith.constant 0.000000e+00 : f32
      %28 = vector.broadcast %cst_10 : f32 to vector<16x128xf32>
      %29 = vector.broadcast %cst_11 : f32 to vector<16x128xf32>
      %30 = arith.select %27, %28, %29 : vector<16x128xi1>, vector<16x128xf32>
      %31 = arith.mulf %22, %30 : vector<16x128xf32>
      %32 = vector.shape_cast %31 : vector<16x128xf32> to vector<2x8x128xf32>
      %cst_12 = arith.constant dense<0.000000e+00> : vector<8x128xf32>
      %33 = vector.multi_reduction <add>, %32, %cst_12 [0] : vector<2x8x128xf32> to vector<8x128xf32>
      %34 = arith.addf %22, %30 : vector<16x128xf32>
      %35 = vector.shape_cast %34 : vector<16x128xf32> to vector<2x8x128xf32>
      %cst_13 = arith.constant dense<0.000000e+00> : vector<8x128xf32>
      %36 = vector.multi_reduction <add>, %35, %cst_13 [0] : vector<2x8x128xf32> to vector<8x128xf32>
      %c0_14 = arith.constant 0 : index
      %c0_15 = arith.constant 0 : index
      %c0_16 = arith.constant 0 : index
      %37 = vector.load %arg4[%c0_14, %c0_15, %c0_16] : memref<1x8x128xf32, #tpu.memory_space<vmem>>, vector<1x8x128xf32>
      %38 = vector.shape_cast %37 : vector<1x8x128xf32> to vector<8x128xf32>
      %39 = arith.addf %38, %33 : vector<8x128xf32>
      %c0_17 = arith.constant 0 : index
      %c0_18 = arith.constant 0 : index
      %c0_19 = arith.constant 0 : index
      %40 = vector.load %arg4[%c0_17, %c0_18, %c0_19] : memref<1x8x128xf32, #tpu.memory_space<vmem>>, vector<1x8x128xf32>
      %41 = vector.shape_cast %40 : vector<1x8x128xf32> to vector<8x128xf32>
      %42 = vector.shape_cast %39 : vector<8x128xf32> to vector<1x8x128xf32>
      tpu.vector_store %arg4[%c0_17, %c0_18, %c0_19], %42 {strides = array<i32>} : memref<1x8x128xf32, #tpu.memory_space<vmem>>, vector<1x8x128xf32>,
      %c0_20 = arith.constant 0 : index
      %c0_21 = arith.constant 0 : index
      %c0_22 = arith.constant 0 : index
      %43 = vector.load %arg5[%c0_20, %c0_21, %c0_22] : memref<1x8x128xf32, #tpu.memory_space<vmem>>, vector<1x8x128xf32>
      %44 = vector.shape_cast %43 : vector<1x8x128xf32> to vector<8x128xf32>
      %45 = arith.addf %44, %36 : vector<8x128xf32>
      %c0_23 = arith.constant 0 : index
      %c0_24 = arith.constant 0 : index
      %c0_25 = arith.constant 0 : index
      %46 = vector.load %arg5[%c0_23, %c0_24, %c0_25] : memref<1x8x128xf32, #tpu.memory_space<vmem>>, vector<1x8x128xf32>
      %47 = vector.shape_cast %46 : vector<1x8x128xf32> to vector<8x128xf32>
      %48 = vector.shape_cast %45 : vector<8x128xf32> to vector<1x8x128xf32>
      tpu.vector_store %arg5[%c0_23, %c0_24, %c0_25], %48 {strides = array<i32>} : memref<1x8x128xf32, #tpu.memory_space<vmem>>, vector<1x8x128xf32>,
    } else {
    }
    return
  }
  func.func @transform_0(%arg0: i32, %arg1: i32) -> (i32, i32) {
    %c1_i32 = arith.constant 1 : i32
    %0 = arith.muli %arg0, %c1_i32 : i32
    %1 = arith.addi %0, %arg1 : i32
    %c0_i32 = arith.constant 0 : i32
    %2 = arith.minsi %1, %c0_i32 : i32
    %c0_i32_0 = arith.constant 0 : i32
    %c0_i32_1 = arith.constant 0 : i32
    return %2, %c0_i32_0 : i32, i32
  }
  func.func @transform_1(%arg0: i32, %arg1: i32) -> (i32, i32) {
    %c1_i32 = arith.constant 1 : i32
    %0 = arith.muli %arg0, %c1_i32 : i32
    %1 = arith.addi %0, %arg1 : i32
    %c0_i32 = arith.constant 0 : i32
    %2 = arith.minsi %1, %c0_i32 : i32
    %c0_i32_0 = arith.constant 0 : i32
    %c0_i32_1 = arith.constant 0 : i32
    return %2, %c0_i32_0 : i32, i32
  }
  func.func @transform_2(%arg0: i32, %arg1: i32) -> (i32, i32, i32) {
    %c0_i32 = arith.constant 0 : i32
    %c0_i32_0 = arith.constant 0 : i32
    %c0_i32_1 = arith.constant 0 : i32
    return %arg0, %c0_i32, %c0_i32_0 : i32, i32, i32
  }
  func.func @transform_3(%arg0: i32, %arg1: i32) -> (i32, i32, i32) {
    %c0_i32 = arith.constant 0 : i32
    %c0_i32_0 = arith.constant 0 : i32
    %c0_i32_1 = arith.constant 0 : i32
    return %arg0, %c0_i32, %c0_i32_0 : i32, i32, i32
  }
}

</mosaic_0001>

<bundles_post_ra>
// kernel: tpu_custom_call.1
= control target key start
LH: loop header
LB: loop body
LE: loop exit
PB: predicated region body
PF: predicated region fallthrough
CT: control target
= control target key end

     0   :  { %9 = vsyncpa [#allocation3], 0  ;;  %s352_s0 = inlined_call_operand.hbm [shape: f32[16,128], index: 0, kind: input, shape index: {}]   ;;  %s353_s1 = inlined_call_operand.hbm [shape: f32[16,128], index: 1, kind: input, shape index: {}]   ;;  %s354_s2 = inlined_call_operand.hbm [shape: f32[1,8,128], index: 2, kind: output, shape index: {0}]   ;;  %s355_s3 = inlined_call_operand.hbm [shape: f32[1,8,128], index: 3, kind: output, shape index: {1}]  }
   0x1   :  { %10 = vsyncpa [#allocation6], 0 }
   0x2   :  { %11 = vsyncpa [#allocation4], 0 }
   0x3   :  { %12 = vsyncpa [#allocation9], 0  ;;  %s277_s12 = smov [#allocation2]   ;;  %s181_s16 = scalar_lea.hbm %s352_s0, 256 }
   0x4   :  { %s24_s13 = sshll.u32 %s277_s12, 4  ;;  %p182_p0 = scmp.ne.s32.totalorder %s352_s0, %s181_s16  ;;  %s25_s13 = int_to_ptr.vmem [resolvable:$true] %s24_s13 }
   0x5   :  { %p185_p1 = scmp.lt.u32.totalorder %s181_s16, %s352_s0 }
   0x7   :  { %p187_p2 = pnand %p185_p1, %p182_p0 }
   0x9   :  { %190 = shalt.err (!%p187_p2)
}
   0xa   :  { %s191_s21 = scalar_lea.vmem %s25_s13, 256  ;;  %p196_p4 = scmp.lt.s32.totalorder %s25_s13, %s25_s13 }
   0xb   :  { %p192_p3 = scmp.ne.s32.totalorder %s25_s13, %s191_s21  ;;  %p197_p5 = scmp.lt.s32.totalorder %s191_s21, %s191_s21 }
   0xd   :  { %p198_p6 = por %p197_p5, %p196_p4 }
   0xf   :  { %p199_p7 = pnand %p198_p6, %p192_p3 }
  0x11   :  { %202 = shalt.err (!%p199_p7)
}
  0x12   :  { %s278_s22 = smov 128   ;;  %s279_s23 = smov 8  }
  0x13   :  { %30 = dma.hbm_to_vmem [thread:$0]  %s352_s0, 256, %s25_s13, [#allocation3], %s278_s22, %s278_s22, %s279_s23  }
  0x14   :  { %s280_s26 = smov [#allocation5]   ;;  %s203_s30 = scalar_lea.hbm %s353_s1, 256 }
  0x15   :  { %s42_s27 = sshll.u32 %s280_s26, 4  ;;  %p204_p8 = scmp.ne.s32.totalorder %s353_s1, %s203_s30  ;;  %s43_s27 = int_to_ptr.vmem [resolvable:$true] %s42_s27 }
  0x16   :  { %p207_p9 = scmp.lt.u32.totalorder %s203_s30, %s353_s1 }
  0x18   :  { %p209_p10 = pnand %p207_p9, %p204_p8 }
  0x1a   :  { %212 = shalt.err (!%p209_p10)
}
  0x1b   :  { %s213_s8 = scalar_lea.vmem %s43_s27, 256  ;;  %p218_p12 = scmp.lt.s32.totalorder %s43_s27, %s43_s27 }
  0x1c   :  { %p214_p11 = scmp.ne.s32.totalorder %s43_s27, %s213_s8  ;;  %p219_p13 = scmp.lt.s32.totalorder %s213_s8, %s213_s8 }
  0x1e   :  { %p220_p0 = por %p219_p13, %p218_p12 }
  0x20   :  { %p221_p1 = pnand %p220_p0, %p214_p11 }
  0x22   :  { %224 = shalt.err (!%p221_p1)
}
  0x23   :  { %48 = dma.hbm_to_vmem [thread:$0]  %s353_s1, 256, %s43_s27, [#allocation6], %s278_s22, %s278_s22, %s279_s23  }
  0x24   :  { %269 = dma.done.wait [#allocation3], 256  }
  0x25   :  { %270 = vsyncadd [#allocation3], 4294967040 }
  0x26   :  { %271 = dma.done.wait [#allocation6], 256  }
  0x27   :  { %272 = vsyncadd [#allocation6], 4294967040  ;;  %v79_v0 = vld [vmem:[#allocation2] sm:$0xff]  ;;  %v80_v1 = vld [vmem:[#allocation2 + $0x8] sm:$0xff]  ;;  %v281_v4 = vmov 0.0   ;;  %s282_s10 = smov [#allocation7]  }
  0x28   :  { %v77_v2 = vld [vmem:[#allocation5] sm:$0xff]  ;;  %vm81_vm0 = vcmp.gt.f32.partialorder %v79_v0, 0.5  ;;  %vm82_vm1 = vcmp.gt.f32.partialorder %v80_v1, 0.5  ;;  %v78_v3 = vld [vmem:[#allocation5 + $0x8] sm:$0xff]  ;;  %s144_s11 = sshll.u32 %s282_s10, 4  ;;  %s283_s1 = smov [#allocation8]   ;;  %s145_s11 = int_to_ptr.vmem [resolvable:$true] %s144_s11 }
  0x29   :  { %v172_v5 = vsel %vm81_vm0, 1.0, %v281_v4  ;;  %v173_v6 = vsel %vm82_vm1, 1.0, %v281_v4  ;;  %s154_s12 = sshll.u32 %s283_s1, 4  ;;  %s225_s13 = scalar_lea.vmem %s145_s11, 128  ;;  %s155_s12 = int_to_ptr.vmem [resolvable:$true] %s154_s12 }
  0x2a   :  { %v87_v7 = vmul.f32 %v172_v5, %v77_v2  ;;  %v88_v8 = vmul.f32 %v173_v6, %v78_v3  ;;  %v90_v9 = vadd.f32 %v172_v5, %v77_v2  ;;  %v91_v10 = vadd.f32 %v173_v6, %v78_v3  ;;  %p226_p2 = scmp.ne.s32.totalorder %s145_s11, %s225_s13  ;;  %p230_p3 = scmp.lt.s32.totalorder %s145_s11, %s145_s11 }
  0x2b   :  { %p231_p4 = scmp.lt.s32.totalorder %s225_s13, %s225_s13 }
  0x2c   :  { %v89_v11 = vadd.f32 %v88_v8, %v87_v7  ;;  %v92_v12 = vadd.f32 %v91_v10, %v90_v9 }
  0x2d   :  { %p232_p5 = por %p231_p4, %p230_p3 }
  0x2e   :  { %95 = vst [vmem:[#allocation7] sm:$0xff] %v89_v11  ;;  %98 = vst [vmem:[#allocation8] sm:$0xff] %v92_v12 }
  0x2f   :  { %p233_p6 = pnand %p232_p5, %p226_p2 }
  0x31   :  { %236 = shalt.err (!%p233_p6)
}
  0x32   :  { %s237_s16 = scalar_lea.hbm %s354_s2, 128 }
  0x33   :  { %p238_p7 = scmp.ne.s32.totalorder %s354_s2, %s237_s16  ;;  %p241_p8 = scmp.lt.u32.totalorder %s237_s16, %s354_s2 }
  0x35   :  { %p243_p9 = pnand %p241_p8, %p238_p7 }
  0x37   :  { %246 = shalt.err (!%p243_p9)
}
  0x38   :  { %147 = dma.vmem_to_hbm [thread:$0]  %s145_s11, 128, %s354_s2, [#allocation4]  }
  0x39   :  { %s247_s23 = scalar_lea.vmem %s155_s12, 128  ;;  %p252_p11 = scmp.lt.s32.totalorder %s155_s12, %s155_s12 }
  0x3a   :  { %p248_p10 = scmp.ne.s32.totalorder %s155_s12, %s247_s23  ;;  %p253_p12 = scmp.lt.s32.totalorder %s247_s23, %s247_s23 }
  0x3c   :  { %p254_p13 = por %p253_p12, %p252_p11 }
  0x3e   :  { %p255_p0 = pnand %p254_p13, %p248_p10 }
  0x40   :  { %258 = shalt.err (!%p255_p0)
}
  0x41   :  { %s259_s26 = scalar_lea.hbm %s355_s3, 128 }
  0x42   :  { %p260_p1 = scmp.ne.s32.totalorder %s355_s3, %s259_s26  ;;  %p263_p2 = scmp.lt.u32.totalorder %s259_s26, %s355_s3 }
  0x44   :  { %p265_p3 = pnand %p263_p2, %p260_p1 }
  0x46   :  { %268 = shalt.err (!%p265_p3)
}
  0x47   :  { %157 = dma.vmem_to_hbm [thread:$0]  %s155_s12, 128, %s355_s3, [#allocation9]  }
  0x48   :  { %273 = dma.done.wait [#allocation4], 128  }
  0x49   :  { %274 = vsyncadd [#allocation4], 4294967168 }
  0x4a   :  { %275 = dma.done.wait [#allocation9], 128  }
  0x4b   :  { %276 = vsyncadd [#allocation9], 4294967168 }
  0x4c   :  { %164 = vsyncpa [#allocation3], 1 }
  0x4d   :  { %165 = vsyncpa [#allocation6], 1 }
  0x4e   :  { %166 = vsyncpa [#allocation4], 1 }
  0x4f   :  { %167 = vsyncpa [#allocation9], 1 }

</bundles_post_ra>
